<compile_context>
chip_gen: v7x
topology: tpu7x:2x2x1
jax: 0.10.0
libtpu: 0.0.40
codegen_flags: <defaults>
</compile_context>

<pallas_src>
from functools import partial

import jax
import jax.numpy as jnp
from jax.experimental import pallas as pl
from jax.experimental.pallas import tpu as pltpu


def _round_up(x, m):
    return ((x + m - 1) // m) * m


# --------------------------------------------------------------------------
# Kernel 1: global average pool over the spatial axis (tiled reduction).
# x block: (R, T) ; pooled block: (R, 1), resident across the spatial axis.
# --------------------------------------------------------------------------
def _pool_kernel(x_ref, pooled_ref, *, inv_hw):
    s = pl.program_id(1)

    @pl.when(s == 0)
    def _():
        pooled_ref[...] = jnp.zeros_like(pooled_ref)

    x = x_ref[...].astype(jnp.float32)
    pooled_ref[...] += jnp.sum(x, axis=-1, keepdims=True)

    @pl.when(s == pl.num_programs(1) - 1)
    def _():
        pooled_ref[...] = pooled_ref[...] * inv_hw  # multiply by 1/HW (no divide)


# --------------------------------------------------------------------------
# Kernel 2: excitation MLP (fc1 + ReLU, fc2 + h_sigmoid), once per call.
# Tiny single-block kernel; the MXU work here is negligible vs. HBM traffic.
# --------------------------------------------------------------------------
def _excite_kernel(y_ref, w1_ref, b1_ref, w2_ref, b2_ref, s_ref):
    y = y_ref[...]                                                     # (B, C) f32
    y = jnp.dot(y, w1_ref[...], preferred_element_type=jnp.float32) + b1_ref[...]
    y = jnp.maximum(y, 0.0)                                            # ReLU
    y = jnp.dot(y, w2_ref[...], preferred_element_type=jnp.float32) + b2_ref[...]
    s_ref[...] = jnp.clip(y + 3.0, 0.0, 6.0) * (1.0 / 6.0)             # h_sigmoid


# --------------------------------------------------------------------------
# Kernel 3: channel-wise rescale of x by the per-(batch, channel) gate.
# --------------------------------------------------------------------------
def _scale_kernel(x_ref, s_ref, o_ref):
    scale = s_ref[...]                                  # (R, 1), broadcast over lanes
    o_ref[...] = (x_ref[...] * scale).astype(o_ref.dtype)


def se_layer(x, w1, b1, w2, b2, *, max_row_tile=256, max_col_tile=2048):
    """x: (B, C, H, W). Returns (B, C, H, W). Matches the PyTorch SELayer forward."""
    b, c, h, w = x.shape
    hw = h * w
    rows = b * c
    x2 = x.reshape(rows, hw)

    # Tile sizes: rows in multiples of 8 (sublane), spatial in multiples of 128
    # (lane-dense, unmasked stores). Cap the block at ~2 MiB f32 so the
    # double-buffered working set fits default scoped VMEM on v5e/v6e/v7x.
    t_r = min(_round_up(rows, 8), max_row_tile)
    t_s = min(_round_up(hw, 128), max_col_tile)
    rows_pad = _round_up(rows, t_r)
    cols_pad = _round_up(hw, t_s)
    if (rows_pad, cols_pad) != (rows, hw):
        x2 = jnp.pad(x2, ((0, rows_pad - rows), (0, cols_pad - hw)))

    n_r = rows_pad // t_r
    n_s = cols_pad // t_s

    # ---- 1) global average pool (AdaptiveAvgPool2d(1)) --------------------
    pooled = pl.pallas_call(
        partial(_pool_kernel, inv_hw=1.0 / float(hw)),
        out_shape=jax.ShapeDtypeStruct((rows_pad, 1), jnp.float32),
        grid=(n_r, n_s),
        in_specs=[pl.BlockSpec((t_r, t_s), lambda r, s: (r, s))],
        out_specs=pl.BlockSpec((t_r, 1), lambda r, s: (r, 0)),
        compiler_params=pltpu.CompilerParams(
            dimension_semantics=("parallel", "arbitrary")),
    )(x2)

    # ---- 2) excitation MLP: fc1 + ReLU, fc2 + h_sigmoid --------------------
    y = pooled[:rows, 0].reshape(b, c)
    vmem = pl.BlockSpec(memory_space=pltpu.MemorySpace.VMEM)
    scales = pl.pallas_call(
        _excite_kernel,
        out_shape=jax.ShapeDtypeStruct((b, c), jnp.float32),
        in_specs=[vmem] * 5,
        out_specs=vmem,
    )(y, w1, b1, w2, b2)

    # ---- 3) channel-wise rescale of x --------------------------------------
    s_flat = scales.reshape(rows, 1)
    if rows_pad != rows:
        s_flat = jnp.pad(s_flat, ((0, rows_pad - rows), (0, 0)))

    out = pl.pallas_call(
        _scale_kernel,
        out_shape=jax.ShapeDtypeStruct((rows_pad, cols_pad), x.dtype),
        grid=(n_r, n_s),
        in_specs=[pl.BlockSpec((t_r, t_s), lambda r, s: (r, s)),
                  pl.BlockSpec((t_r, 1), lambda r, s: (r, 0))],
        out_specs=pl.BlockSpec((t_r, t_s), lambda r, s: (r, s)),
        compiler_params=pltpu.CompilerParams(
            dimension_semantics=("parallel", "parallel")),
    )(x2, s_flat)

    return out[:rows, :hw].reshape(b, c, h, w)


def reference_se_layer(x, w1, b1, w2, b2):
    """Pure-JAX reference matching the PyTorch forward semantics."""
    bsz, c, _, _ = x.shape
    y = jnp.mean(x, axis=(2, 3))                       # (B, C)
    y = y @ w1 + b1[0]                                 # fc1
    y = jnp.maximum(y, 0.0)                            # ReLU
    y = y @ w2 + b2[0]                                 # fc2
    y = jnp.clip(y + 3.0, 0.0, 6.0) / 6.0              # h_sigmoid
    return x * y[:, :, None, None]


if __name__ == "__main__":
    # Small shapes consistent with the module: batch=2, channels=4, spatial=16,
    # reduction=4  ->  hidden = channels // reduction = 1.
    B, C, H, W = 2, 4, 16, 16
    REDUCTION = 4
    CR = C // REDUCTION

    key = jax.random.PRNGKey(0)
    kx, k1, k2, k3, k4 = jax.random.split(key, 5)

    x = jax.random.normal(kx, (B, C, H, W), dtype=jnp.float32)

    # Parameters: nn.Linear(C, C//4) and nn.Linear(C//4, C), stored as (in, out).
    w1 = jax.random.normal(k1, (C, CR), dtype=jnp.float32) * 0.5
    b1 = jax.random.normal(k2, (1, CR), dtype=jnp.float32) * 0.1
    w2 = jax.random.normal(k3, (CR, C), dtype=jnp.float32) * 0.5
    b2 = jax.random.normal(k4, (1, C), dtype=jnp.float32) * 0.1

    out = se_layer(x, w1, b1, w2, b2)
    out = jax.block_until_ready(out)

    ref = reference_se_layer(x, w1, b1, w2, b2)
    assert out.shape == (B, C, H, W)
    assert jnp.allclose(out, ref, atol=1e-5, rtol=1e-5), "mismatch vs reference"

    print("KERNEL_OK")
</pallas_src>

<mosaic_0001>
module attributes {stable_mosaic.version = 11 : i64} {
  func.func @_pool_kernel(%arg0: i32, %arg1: i32, %arg2: memref<8x256xf32, #tpu.memory_space<vmem>>, %arg3: memref<8x1xf32, #tpu.memory_space<vmem>>) attributes {dimension_semantics = [#tpu.dimension_semantics<parallel>, #tpu.dimension_semantics<arbitrary>], iteration_bounds = array<i64: 1, 1>, scalar_prefetch = 0 : i64, scratch_operands = 0 : i64, tpu.core_type = #tpu.core_type<tc>, window_params = [{transform_indices = @transform_0, window_bounds = array<i64: 8, 256>}, {transform_indices = @transform_1, window_bounds = array<i64: 8, 1>}]} {
    %c0_i32 = arith.constant 0 : i32
    %0 = arith.cmpi eq, %arg1, %c0_i32 : i32
    %1 = arith.extui %0 : i1 to i32
    %c0_i32_0 = arith.constant 0 : i32
    %2 = arith.cmpi ne, %1, %c0_i32_0 : i32
    scf.if %2 {
      %cst_8 = arith.constant 0.000000e+00 : f32
      %12 = vector.broadcast %cst_8 : f32 to vector<8x1xf32>
      %c0_9 = arith.constant 0 : index
      %c0_10 = arith.constant 0 : index
      %13 = vector.load %arg3[%c0_9, %c0_10] : memref<8x1xf32, #tpu.memory_space<vmem>>, vector<8x1xf32>
      tpu.vector_store %arg3[%c0_9, %c0_10], %12 {strides = array<i32>} : memref<8x1xf32, #tpu.memory_space<vmem>>, vector<8x1xf32>,
    } else {
    }
    %c0 = arith.constant 0 : index
    %c0_1 = arith.constant 0 : index
    %3 = vector.load %arg2[%c0, %c0_1] : memref<8x256xf32, #tpu.memory_space<vmem>>, vector<8x256xf32>
    %c0_2 = arith.constant 0 : index
    %c0_3 = arith.constant 0 : index
    %4 = vector.load %arg3[%c0_2, %c0_3] : memref<8x1xf32, #tpu.memory_space<vmem>>, vector<8x1xf32>
    %cst = arith.constant dense<0.000000e+00> : vector<8xf32>
    %5 = vector.multi_reduction <add>, %3, %cst [1] : vector<8x256xf32> to vector<8xf32>
    %6 = vector.shape_cast %5 : vector<8xf32> to vector<8x1xf32>
    %7 = arith.addf %4, %6 : vector<8x1xf32>
    %c0_4 = arith.constant 0 : index
    %c0_5 = arith.constant 0 : index
    %8 = vector.load %arg3[%c0_4, %c0_5] : memref<8x1xf32, #tpu.memory_space<vmem>>, vector<8x1xf32>
    tpu.vector_store %arg3[%c0_4, %c0_5], %7 {strides = array<i32>} : memref<8x1xf32, #tpu.memory_space<vmem>>, vector<8x1xf32>,
    %c0_i32_6 = arith.constant 0 : i32
    %9 = arith.cmpi eq, %arg1, %c0_i32_6 : i32
    %10 = arith.extui %9 : i1 to i32
    %c0_i32_7 = arith.constant 0 : i32
    %11 = arith.cmpi ne, %10, %c0_i32_7 : i32
    scf.if %11 {
      %c0_8 = arith.constant 0 : index
      %c0_9 = arith.constant 0 : index
      %12 = vector.load %arg3[%c0_8, %c0_9] : memref<8x1xf32, #tpu.memory_space<vmem>>, vector<8x1xf32>
      %cst_10 = arith.constant 3.906250e-03 : f32
      %13 = vector.broadcast %cst_10 : f32 to vector<8x1xf32>
      %14 = arith.mulf %12, %13 : vector<8x1xf32>
      %c0_11 = arith.constant 0 : index
      %c0_12 = arith.constant 0 : index
      %15 = vector.load %arg3[%c0_11, %c0_12] : memref<8x1xf32, #tpu.memory_space<vmem>>, vector<8x1xf32>
      tpu.vector_store %arg3[%c0_11, %c0_12], %14 {strides = array<i32>} : memref<8x1xf32, #tpu.memory_space<vmem>>, vector<8x1xf32>,
    } else {
    }
    return
  }
  func.func @transform_0(%arg0: i32, %arg1: i32) -> (i32, i32) {
    %c0_i32 = arith.constant 0 : i32
    return %arg0, %arg1 : i32, i32
  }
  func.func @transform_1(%arg0: i32, %arg1: i32) -> (i32, i32) {
    %c0_i32 = arith.constant 0 : i32
    %c0_i32_0 = arith.constant 0 : i32
    return %arg0, %c0_i32 : i32, i32
  }
}

</mosaic_0001>

<bundles_post_ra>
// kernel: tpu_custom_call.1
= control target key start
LH: loop header
LB: loop body
LE: loop exit
PB: predicated region body
PF: predicated region fallthrough
CT: control target
= control target key end

     0   :  { %6 = vsyncpa [#allocation3], 0  ;;  %s72_s6 = smov [#allocation2]   ;;  %s111_s0 = inlined_call_operand.hbm [shape: f32[8,256], index: 0, kind: input, shape index: {}]   ;;  %s112_s1 = inlined_call_operand.vmem [shape: f32[8,1], index: 1, kind: output, shape index: {}]  }
   0x1   :  { %s13_s7 = sshll.u32 %s72_s6, 4  ;;  %s48_s10 = scalar_lea.hbm %s111_s0, 256  ;;  %s14_s7 = int_to_ptr.vmem [resolvable:$true] %s13_s7 }
   0x2   :  { %p49_p0 = scmp.ne.s32.totalorder %s111_s0, %s48_s10  ;;  %p52_p1 = scmp.lt.u32.totalorder %s48_s10, %s111_s0 }
   0x4   :  { %p54_p2 = pnand %p52_p1, %p49_p0 }
   0x6   :  { %57 = shalt.err (!%p54_p2)
}
   0x7   :  { %s58_s15 = scalar_lea.vmem %s14_s7, 256  ;;  %p63_p4 = scmp.lt.s32.totalorder %s14_s7, %s14_s7 }
   0x8   :  { %p59_p3 = scmp.ne.s32.totalorder %s14_s7, %s58_s15  ;;  %p64_p5 = scmp.lt.s32.totalorder %s58_s15, %s58_s15 }
   0xa   :  { %p65_p6 = por %p64_p5, %p63_p4 }
   0xc   :  { %p66_p7 = pnand %p65_p6, %p59_p3 }
   0xe   :  { %69 = shalt.err (!%p66_p7)
}
   0xf   :  { %16 = dma.hbm_to_vmem [thread:$0]  %s111_s0, 256, %s14_s7, [#allocation3]  }
  0x10   :  { %70 = dma.done.wait [#allocation3], 256  }
  0x11   :  { %71 = vsyncadd [#allocation3], 4294967040  ;;  %vm24_vm0 = vcmask 7168   ;;  %v73_v0 = vmov 0.0   ;;  %v26_v1 = vld [vmem:[#allocation2] sm:$0xff]  ;;  %v27_v2 = vld [vmem:[#allocation2 + $0x8] sm:$0xff] }
  0x12   :  { %25 = vst.msk [vmem:[%s112_s1] sm:$0xff] %vm24_vm0, %v73_v0  ;;  %v29_v3 = vadd.f32 %v27_v2, %v26_v1 }
  0x14   :  { %30 = vadd.xlane.f32.xlu0 %v29_v3 }
  0x19   :  { %v28_v4 = vld [vmem:[%s112_s1] sm:$0xff] }
  0xa1   :  { %v31_v5 = vpop.xlane.xlu0 %30 }
  0xa2   :  { %v32_v6 = vadd.f32 %v31_v5, %v28_v4 }
  0xa4   :  { %34 = vst.msk [vmem:[%s112_s1] sm:$0xff] %vm24_vm0, %v32_v6 }
  0xab   :  { %v38_v7 = vld [vmem:[%s112_s1] sm:$0xff] }
  0xac   :  { %v39_v8 = vmul.f32 0.00390625, %v38_v7 }
  0xae   :  { %40 = vst.msk [vmem:[%s112_s1] sm:$0xff] %vm24_vm0, %v39_v8 }
  0xaf   :  { %45 = vsyncpa [#allocation3], 1 }

</bundles_post_ra>
